<compile_context>
chip_gen: v6e
topology: v6e:2x2x1
jax: 0.10.0
libtpu: 0.0.40
codegen_flags: <defaults>
</compile_context>

<pallas_src>
import jax
import jax.numpy as jnp
from jax.experimental import pallas as pl
from jax.experimental.pallas import tpu as pltpu

_EPS = 1e-6
_VMEM_BUDGET = 32 * 1024 * 1024  # conservative working-set target (fits v5e/v6e/v7x)


def _round_up(x, m):
    return ((x + m - 1) // m) * m


def _layernorm_rows(s, gamma, beta):
    # s: (rows, d) f32. Two-pass centered variance == PyTorch LayerNorm (biased var).
    mean = jnp.mean(s, axis=-1, keepdims=True)
    c = s - mean
    var = jnp.mean(c * c, axis=-1, keepdims=True)
    inv = jax.lax.rsqrt(var + _EPS)
    return c * inv * gamma + beta


# ----------------------------------------------------------------------------
# Kernel 1: fully fused  LayerNorm(x + x @ W)   (linear sublayer fused in)
# ----------------------------------------------------------------------------
def _fused_linear_add_norm_kernel(x_lhs_ref, w_ref, x_res_ref, g_ref, b_ref,
                                  o_ref, acc_ref):
    k = pl.program_id(1)

    @pl.when(k == 0)
    def _():
        # Initialize the accumulator with the residual branch (x itself).
        acc_ref[...] = x_res_ref[...].astype(jnp.float32)

    acc_ref[...] += jnp.dot(x_lhs_ref[...], w_ref[...],
                            preferred_element_type=jnp.float32)

    @pl.when(k == pl.num_programs(1) - 1)
    def _():
        out = _layernorm_rows(acc_ref[...],
                              g_ref[...].astype(jnp.float32),
                              b_ref[...].astype(jnp.float32))
        o_ref[...] = out.astype(o_ref.dtype)


# ----------------------------------------------------------------------------
# Kernel 2: generic  LayerNorm(x + y)  (for arbitrary, precomputed sublayer(x))
# ----------------------------------------------------------------------------
def _add_norm_kernel(x_ref, y_ref, g_ref, b_ref, o_ref):
    s = x_ref[...].astype(jnp.float32) + y_ref[...].astype(jnp.float32)
    out = _layernorm_rows(s, g_ref[...].astype(jnp.float32),
                          b_ref[...].astype(jnp.float32))
    o_ref[...] = out.astype(o_ref.dtype)


# ----------------------------------------------------------------------------
# Tile sizing
# ----------------------------------------------------------------------------
def _pick_block_rows(n, per_row_bytes, fixed_bytes, budget=_VMEM_BUDGET):
    # Largest row tile that fits the budget; multiple of 16 (clean bf16 sublane
    # packing), capped at 1024 rows and at the (padded) total row count.
    br = (budget - fixed_bytes) // max(per_row_bytes, 1)
    br = max(16, min(int(br), 1024))
    br = min(br, _round_up(n, 16))
    br = max(16, (br // 16) * 16)
    return br


def _vmem_limit(per_row_bytes, br, fixed_bytes):
    est = int(1.25 * (per_row_bytes * br + fixed_bytes))
    return int(min(max(est, 16 << 20), 50 << 20))  # stays below v7x's 64 MiB VMEM


# ----------------------------------------------------------------------------
# Wrappers
# ----------------------------------------------------------------------------
def fused_sublayer_add_and_norm(x, w_sub, gamma, beta):
    """out = LayerNorm_{eps=1e-6}(x + x @ w_sub).  x: [nb,nw,d], w_sub: [d,d]."""
    nb, nw, d = x.shape
    n = nb * nw
    in_sz = x.dtype.itemsize
    out_sz = x.dtype.itemsize
    w_sz = w_sub.dtype.itemsize

    # Contraction tile (lane-aligned divisor of d); reduction axis is last in grid.
    if d % 512 == 0 and d > 512:
        tk = 512
    elif d % 256 == 0 and d > 256:
        tk = 256
    elif d % 128 == 0 and d > 128:
        tk = 128
    else:
        tk = d
    num_k = d // tk

    # VMEM estimate: double-buffered {lhs, residual, out} row tiles, double-buffered
    # weight tile, f32 accumulator scratch + live f32 intermediates margin.
    per_row = 2 * (tk + d) * in_sz + 2 * d * out_sz + d * 4 + 2 * d * 4
    fixed = 2 * tk * d * w_sz + 4 * d * 4
    br = _pick_block_rows(n, per_row, fixed)

    n_pad = _round_up(n, br)
    x2 = x.reshape(n, d)
    if n_pad != n:
        x2 = jnp.pad(x2, ((0, n_pad - n), (0, 0)))
    g2 = gamma.reshape(1, d)
    b2 = beta.reshape(1, d)

    out = pl.pallas_call(
        _fused_linear_add_norm_kernel,
        out_shape=jax.ShapeDtypeStruct((n_pad, d), x.dtype),
        grid_spec=pltpu.PrefetchScalarGridSpec(
            num_scalar_prefetch=0,
            grid=(n_pad // br, num_k),
            in_specs=[
                pl.BlockSpec((br, tk), lambda i, k: (i, k)),   # x as matmul LHS
                pl.BlockSpec((tk, d), lambda i, k: (k, 0)),    # sublayer weight
                pl.BlockSpec((br, d), lambda i, k: (i, 0)),    # x as residual (resident across k)
                pl.BlockSpec((1, d), lambda i, k: (0, 0)),     # gamma
                pl.BlockSpec((1, d), lambda i, k: (0, 0)),     # beta
            ],
            out_specs=pl.BlockSpec((br, d), lambda i, k: (i, 0)),
            scratch_shapes=[pltpu.VMEM((br, d), jnp.float32)],
        ),
        compiler_params=pltpu.CompilerParams(
            dimension_semantics=("parallel", "arbitrary"),
            vmem_limit_bytes=_vmem_limit(per_row, br, fixed),
        ),
    )(x2, w_sub, x2, g2, b2)
    return out[:n].reshape(nb, nw, d)


def add_and_norm(x, sublayer_out, gamma, beta):
    """Generic path: out = LayerNorm_{eps=1e-6}(x + sublayer_out) for any sublayer."""
    nb, nw, d = x.shape
    n = nb * nw
    in_sz = x.dtype.itemsize

    per_row = 2 * 2 * d * in_sz + 2 * d * in_sz + 3 * d * 4  # x,y,out dbl-buffered + f32 temps
    fixed = 4 * d * 4
    br = _pick_block_rows(n, per_row, fixed)

    n_pad = _round_up(n, br)
    x2 = x.reshape(n, d)
    y2 = sublayer_out.reshape(n, d)
    if n_pad != n:
        pad = ((0, n_pad - n), (0, 0))
        x2 = jnp.pad(x2, pad)
        y2 = jnp.pad(y2, pad)
    g2 = gamma.reshape(1, d)
    b2 = beta.reshape(1, d)

    out = pl.pallas_call(
        _add_norm_kernel,
        out_shape=jax.ShapeDtypeStruct((n_pad, d), x.dtype),
        grid_spec=pltpu.PrefetchScalarGridSpec(
            num_scalar_prefetch=0,
            grid=(n_pad // br,),
            in_specs=[
                pl.BlockSpec((br, d), lambda i: (i, 0)),
                pl.BlockSpec((br, d), lambda i: (i, 0)),
                pl.BlockSpec((1, d), lambda i: (0, 0)),
                pl.BlockSpec((1, d), lambda i: (0, 0)),
            ],
            out_specs=pl.BlockSpec((br, d), lambda i: (i, 0)),
        ),
        compiler_params=pltpu.CompilerParams(
            dimension_semantics=("parallel",),
            vmem_limit_bytes=_vmem_limit(per_row, br, fixed),
        ),
    )(x2, y2, g2, b2)
    return out[:n].reshape(nb, nw, d)


if __name__ == "__main__":
    # Small shapes consistent with forward: [nb, nw, d_model]; d_model is a
    # multiple of 128 so loads/stores and the lane reduction are lane-dense.
    nb, nw, d_model = 2, 8, 128

    key = jax.random.PRNGKey(0)
    kx, kw = jax.random.split(key)
    x = jax.random.normal(kx, (nb, nw, d_model), dtype=jnp.float32)

    # Deterministic "sublayer": a simple linear projection.
    w_sub = jax.random.normal(kw, (d_model, d_model), dtype=jnp.float32) * 0.1

    # LayerNorm parameters (PyTorch default init: weight=1, bias=0).
    gamma = jnp.ones((d_model,), dtype=jnp.float32)
    beta = jnp.zeros((d_model,), dtype=jnp.float32)

    # Fused path: sublayer matmul + residual add + LayerNorm in one kernel.
    out_fused = jax.block_until_ready(
        fused_sublayer_add_and_norm(x, w_sub, gamma, beta))

    # Generic path (arbitrary sublayer): sublayer(x) computed in JAX, add+LN fused.
    # TODO(synk): arbitrary (non-linear) sublayers cannot be fused generically;
    # they use this precomputed-sublayer path.
    sublayer_out = jnp.einsum("bnd,de->bne", x, w_sub)
    out_generic = jax.block_until_ready(
        add_and_norm(x, sublayer_out, gamma, beta))

    # Pure-JAX reference (PyTorch LayerNorm: biased variance, eps inside rsqrt).
    s = x + sublayer_out
    mu = jnp.mean(s, axis=-1, keepdims=True)
    var = jnp.mean((s - mu) ** 2, axis=-1, keepdims=True)
    ref = (s - mu) * jax.lax.rsqrt(var + 1e-6) * gamma + beta

    assert jnp.max(jnp.abs(out_generic - ref)) < 1e-4, "generic path mismatch"
    # Fused path recomputes the matmul on the MXU (default f32 matmul precision),
    # so allow a slightly looser tolerance vs. the XLA-einsum-based reference.
    assert jnp.max(jnp.abs(out_fused - ref)) < 2e-2, "fused path mismatch"

    print("KERNEL_OK")
</pallas_src>

<mosaic_0001>
module attributes {stable_mosaic.version = 11 : i64} {
  func.func @_fused_linear_add_norm_kernel(%arg0: i32, %arg1: i32, %arg2: memref<16x128xf32, #tpu.memory_space<vmem>>, %arg3: memref<128x128xf32, #tpu.memory_space<vmem>>, %arg4: memref<16x128xf32, #tpu.memory_space<vmem>>, %arg5: memref<1x128xf32, #tpu.memory_space<vmem>>, %arg6: memref<1x128xf32, #tpu.memory_space<vmem>>, %arg7: memref<16x128xf32, #tpu.memory_space<vmem>>, %arg8: memref<16x128xf32, #tpu.memory_space<vmem>>) attributes {dimension_semantics = [#tpu.dimension_semantics<parallel>, #tpu.dimension_semantics<arbitrary>], iteration_bounds = array<i64: 1, 1>, scalar_prefetch = 0 : i64, scratch_operands = 1 : i64, tpu.core_type = #tpu.core_type<tc>, window_params = [{transform_indices = @transform_0, window_bounds = array<i64: 16, 128>}, {transform_indices = @transform_1, window_bounds = array<i64: 128, 128>}, {transform_indices = @transform_2, window_bounds = array<i64: 16, 128>}, {pipeline_mode = #tpu.pipeline_mode<synchronous>, transform_indices = @transform_3, window_bounds = array<i64: 1, 128>}, {pipeline_mode = #tpu.pipeline_mode<synchronous>, transform_indices = @transform_4, window_bounds = array<i64: 1, 128>}, {transform_indices = @transform_5, window_bounds = array<i64: 16, 128>}]} {
    %c0_i32 = arith.constant 0 : i32
    %0 = arith.cmpi eq, %arg1, %c0_i32 : i32
    %1 = arith.extui %0 : i1 to i32
    %c0_i32_0 = arith.constant 0 : i32
    %2 = arith.cmpi ne, %1, %c0_i32_0 : i32
    scf.if %2 {
      %c0_10 = arith.constant 0 : index
      %c0_11 = arith.constant 0 : index
      %12 = vector.load %arg4[%c0_10, %c0_11] : memref<16x128xf32, #tpu.memory_space<vmem>>, vector<16x128xf32>
      %c0_12 = arith.constant 0 : index
      %c0_13 = arith.constant 0 : index
      %13 = vector.load %arg8[%c0_12, %c0_13] : memref<16x128xf32, #tpu.memory_space<vmem>>, vector<16x128xf32>
      tpu.vector_store %arg8[%c0_12, %c0_13], %12 {strides = array<i32>} : memref<16x128xf32, #tpu.memory_space<vmem>>, vector<16x128xf32>,
    } else {
    }
    %c0 = arith.constant 0 : index
    %c0_1 = arith.constant 0 : index
    %3 = vector.load %arg8[%c0, %c0_1] : memref<16x128xf32, #tpu.memory_space<vmem>>, vector<16x128xf32>
    %c0_2 = arith.constant 0 : index
    %c0_3 = arith.constant 0 : index
    %4 = vector.load %arg2[%c0_2, %c0_3] : memref<16x128xf32, #tpu.memory_space<vmem>>, vector<16x128xf32>
    %c0_4 = arith.constant 0 : index
    %c0_5 = arith.constant 0 : index
    %5 = vector.load %arg3[%c0_4, %c0_5] : memref<128x128xf32, #tpu.memory_space<vmem>>, vector<128x128xf32>
    %cst = arith.constant dense<0.000000e+00> : vector<16x128xf32>
    %6 = tpu.matmul %4, %5, %cst {dimension_numbers = #tpu.dot_dimension_numbers<[1], [0], [0], [1], [0, 0, 1, 1], [], []>} : vector<16x128xf32>, vector<128x128xf32>, vector<16x128xf32> -> vector<16x128xf32>
    %7 = arith.addf %3, %6 : vector<16x128xf32>
    %c0_6 = arith.constant 0 : index
    %c0_7 = arith.constant 0 : index
    %8 = vector.load %arg8[%c0_6, %c0_7] : memref<16x128xf32, #tpu.memory_space<vmem>>, vector<16x128xf32>
    tpu.vector_store %arg8[%c0_6, %c0_7], %7 {strides = array<i32>} : memref<16x128xf32, #tpu.memory_space<vmem>>, vector<16x128xf32>,
    %c0_i32_8 = arith.constant 0 : i32
    %9 = arith.cmpi eq, %arg1, %c0_i32_8 : i32
    %10 = arith.extui %9 : i1 to i32
    %c0_i32_9 = arith.constant 0 : i32
    %11 = arith.cmpi ne, %10, %c0_i32_9 : i32
    scf.if %11 {
      %c0_10 = arith.constant 0 : index
      %c0_11 = arith.constant 0 : index
      %12 = vector.load %arg8[%c0_10, %c0_11] : memref<16x128xf32, #tpu.memory_space<vmem>>, vector<16x128xf32>
      %c0_12 = arith.constant 0 : index
      %c0_13 = arith.constant 0 : index
      %13 = vector.load %arg5[%c0_12, %c0_13] : memref<1x128xf32, #tpu.memory_space<vmem>>, vector<1x128xf32>
      %c0_14 = arith.constant 0 : index
      %c0_15 = arith.constant 0 : index
      %14 = vector.load %arg6[%c0_14, %c0_15] : memref<1x128xf32, #tpu.memory_space<vmem>>, vector<1x128xf32>
      %cst_16 = arith.constant dense<0.000000e+00> : vector<16xf32>
      %15 = vector.multi_reduction <add>, %12, %cst_16 [1] : vector<16x128xf32> to vector<16xf32>
      %16 = vector.shape_cast %15 : vector<16xf32> to vector<16x1xf32>
      %cst_17 = arith.constant 1.280000e+02 : f32
      %17 = vector.broadcast %cst_17 : f32 to vector<16x1xf32>
      %18 = arith.divf %16, %17 : vector<16x1xf32>
      %19 = vector.broadcast %18 : vector<16x1xf32> to vector<16x128xf32>
      %20 = arith.subf %12, %19 : vector<16x128xf32>
      %21 = arith.mulf %20, %20 : vector<16x128xf32>
      %cst_18 = arith.constant dense<0.000000e+00> : vector<16xf32>
      %22 = vector.multi_reduction <add>, %21, %cst_18 [1] : vector<16x128xf32> to vector<16xf32>
      %23 = vector.shape_cast %22 : vector<16xf32> to vector<16x1xf32>
      %cst_19 = arith.constant 1.280000e+02 : f32
      %24 = vector.broadcast %cst_19 : f32 to vector<16x1xf32>
      %25 = arith.divf %23, %24 : vector<16x1xf32>
      %cst_20 = arith.constant 9.99999997E-7 : f32
      %26 = vector.broadcast %cst_20 : f32 to vector<16x1xf32>
      %27 = arith.addf %25, %26 : vector<16x1xf32>
      %28 = math.rsqrt %27 : vector<16x1xf32>
      %29 = vector.broadcast %28 : vector<16x1xf32> to vector<16x128xf32>
      %30 = arith.mulf %20, %29 : vector<16x128xf32>
      %31 = vector.broadcast %13 : vector<1x128xf32> to vector<16x128xf32>
      %32 = arith.mulf %30, %31 : vector<16x128xf32>
      %33 = vector.broadcast %14 : vector<1x128xf32> to vector<16x128xf32>
      %34 = arith.addf %32, %33 : vector<16x128xf32>
      %c0_21 = arith.constant 0 : index
      %c0_22 = arith.constant 0 : index
      %35 = vector.load %arg7[%c0_21, %c0_22] : memref<16x128xf32, #tpu.memory_space<vmem>>, vector<16x128xf32>
      tpu.vector_store %arg7[%c0_21, %c0_22], %34 {strides = array<i32>} : memref<16x128xf32, #tpu.memory_space<vmem>>, vector<16x128xf32>,
    } else {
    }
    return
  }
  func.func @transform_0(%arg0: i32, %arg1: i32) -> (i32, i32) {
    %c0_i32 = arith.constant 0 : i32
    return %arg0, %arg1 : i32, i32
  }
  func.func @transform_1(%arg0: i32, %arg1: i32) -> (i32, i32) {
    %c0_i32 = arith.constant 0 : i32
    %c0_i32_0 = arith.constant 0 : i32
    return %arg1, %c0_i32 : i32, i32
  }
  func.func @transform_2(%arg0: i32, %arg1: i32) -> (i32, i32) {
    %c0_i32 = arith.constant 0 : i32
    %c0_i32_0 = arith.constant 0 : i32
    return %arg0, %c0_i32 : i32, i32
  }
  func.func @transform_3(%arg0: i32, %arg1: i32) -> (i32, i32) {
    %c0_i32 = arith.constant 0 : i32
    %c0_i32_0 = arith.constant 0 : i32
    %c0_i32_1 = arith.constant 0 : i32
    return %c0_i32, %c0_i32_0 : i32, i32
  }
  func.func @transform_4(%arg0: i32, %arg1: i32) -> (i32, i32) {
    %c0_i32 = arith.constant 0 : i32
    %c0_i32_0 = arith.constant 0 : i32
    %c0_i32_1 = arith.constant 0 : i32
    return %c0_i32, %c0_i32_0 : i32, i32
  }
  func.func @transform_5(%arg0: i32, %arg1: i32) -> (i32, i32) {
    %c0_i32 = arith.constant 0 : i32
    %c0_i32_0 = arith.constant 0 : i32
    return %arg0, %c0_i32 : i32, i32
  }
}

</mosaic_0001>

<bundles_post_ra>
// kernel: tpu_custom_call.1
= control target key start
LH: loop header
LB: loop body
LE: loop exit
PB: predicated region body
PF: predicated region fallthrough
CT: control target
= control target key end

     0   :  { %10 = vsyncpa [#allocation4], 0  ;;  %s452_s0 = inlined_call_operand.hbm [shape: f32[16,128], index: 0, kind: input, shape index: {}]   ;;  %s453_s1 = inlined_call_operand.hbm [shape: f32[128,128], index: 1, kind: input, shape index: {}]   ;;  %s454_s2 = inlined_call_operand.hbm [shape: f32[16,128], index: 2, kind: input, shape index: {}]   ;;  %s455_s3 = inlined_call_operand.vmem [shape: f32[1,128], index: 3, kind: input, shape index: {}]   ;;  %s456_s4 = inlined_call_operand.vmem [shape: f32[1,128], index: 4, kind: input, shape index: {}]   ;;  %s457_s5 = inlined_call_operand.hbm [shape: f32[16,128], index: 5, kind: output, shape index: {}]  }
   0x1   :  { %11 = vsyncpa [#allocation7], 0 }
   0x2   :  { %12 = vsyncpa [#allocation5], 0  ;;  %s386_s18 = smov [#allocation6]   ;;  %s387_s20 = smov [#allocation3]  }
   0x3   :  { %s30_s19 = sshll.u32 %s386_s18, 4  ;;  %s18_s21 = sshll.u32 %s387_s20, 4  ;;  %s31_s19 = int_to_ptr.vmem [resolvable:$true] %s30_s19  ;;  %s19_s21 = int_to_ptr.vmem [resolvable:$true] %s18_s21 }
   0x4   :  { %s308_s22 = scalar_lea.vmem %s31_s19, 2048  ;;  %p313_p1 = scmp.lt.s32.totalorder %s31_s19, %s31_s19 }
   0x5   :  { %p309_p0 = scmp.ne.s32.totalorder %s31_s19, %s308_s22  ;;  %p314_p2 = scmp.lt.s32.totalorder %s308_s22, %s308_s22 }
   0x7   :  { %p315_p3 = por %p314_p2, %p313_p1 }
   0x9   :  { %p316_p4 = pnand %p315_p3, %p309_p0 }
   0xb   :  { %319 = shalt.err (!%p316_p4)
}
   0xc   :  { %s388_s23 = smov 128   ;;  %s389_s24 = smov 8  }
   0xd   :  { %36 = dma.hbm_to_vmem [thread:$0]  %s453_s1, 2048, %s31_s19, [#allocation7], %s388_s23, %s388_s23, %s389_s24  }
   0xe   :  { %s328_s27 = scalar_lea.vmem %s19_s21, 256  ;;  %p333_p6 = scmp.lt.s32.totalorder %s19_s21, %s19_s21 }
   0xf   :  { %p329_p5 = scmp.ne.s32.totalorder %s19_s21, %s328_s27  ;;  %p334_p7 = scmp.lt.s32.totalorder %s328_s27, %s328_s27 }
  0x11   :  { %p335_p8 = por %p334_p7, %p333_p6 }
  0x13   :  { %p336_p9 = pnand %p335_p8, %p329_p5 }
  0x15   :  { %339 = shalt.err (!%p336_p9)
}
  0x16   :  { %24 = dma.hbm_to_vmem [thread:$0]  %s452_s0, 256, %s19_s21, [#allocation4], %s388_s23, %s388_s23, %s389_s24  }
  0x17   :  { %s390_s30 = smov [#allocation8]  }
  0x18   :  { %s42_s6 = sshll.u32 %s390_s30, 4  ;;  %s43_s6 = int_to_ptr.vmem [resolvable:$true] %s42_s6 }
  0x19   :  { %s348_s7 = scalar_lea.vmem %s43_s6, 256  ;;  %p353_p11 = scmp.lt.s32.totalorder %s43_s6, %s43_s6 }
  0x1a   :  { %p349_p10 = scmp.ne.s32.totalorder %s43_s6, %s348_s7  ;;  %p354_p12 = scmp.lt.s32.totalorder %s348_s7, %s348_s7 }
  0x1c   :  { %p355_p13 = por %p354_p12, %p353_p11 }
  0x1e   :  { %p356_p0 = pnand %p355_p13, %p349_p10 }
  0x20   :  { %359 = shalt.err (!%p356_p0)
}
  0x21   :  { %48 = dma.hbm_to_vmem [thread:$0]  %s454_s2, 256, %s43_s6, [#allocation7], %s388_s23, %s388_s23, %s389_s24  }
  0x22   :  { %380 = dma.done.wait [#allocation4], 256  }
  0x23   :  { %381 = vsyncadd [#allocation4], 4294967040 }
  0x24   :  { %382 = dma.done.wait [#allocation7], 2304  }
  0x25   :  { %383 = vsyncadd [#allocation7], 4294964992  ;;  %v89_v0 = vld [vmem:[#allocation6 + $0x78] sm:$0xff]  ;;  %v88_v1 = vld [vmem:[#allocation6 + $0x70] sm:$0xff]  ;;  %s391_s11 = smov [#allocation9]  }
  0x26   :  { %255 = vmatprep.subr.mxu0 %v89_v0  ;;  %v87_v2 = vld [vmem:[#allocation6 + $0x68] sm:$0xff]  ;;  %v86_v3 = vld [vmem:[#allocation6 + $0x60] sm:$0xff]  ;;  %v72_v4 = vld [vmem:[#allocation3] sm:$0xff]  ;;  %s222_s12 = sshll.u32 %s391_s11, 4  ;;  %s223_s12 = int_to_ptr.vmem [resolvable:$true] %s222_s12 }
  0x27   :  { %256 = vmatpush3.msra.mxu0 %v89_v0  ;;  %v85_v5 = vld [vmem:[#allocation6 + $0x58] sm:$0xff]  ;;  %287 = vmatprep.mubr.f32.mxu0 %v72_v4  ;;  %v84_v6 = vld [vmem:[#allocation6 + $0x50] sm:$0xff]  ;;  %v83_v7 = vld [vmem:[#allocation6 + $0x48] sm:$0xff]  ;;  %s360_s13 = scalar_lea.vmem %s223_s12, 256  ;;  %p365_p2 = scmp.lt.s32.totalorder %s223_s12, %s223_s12 }
  0x28   :  { %257 = vmatprep.subr.mxu0 %v88_v1  ;;  %v82_v8 = vld [vmem:[#allocation6 + $0x40] sm:$0xff]  ;;  %v81_v9 = vld [vmem:[#allocation6 + $0x38] sm:$0xff]  ;;  %v80_v10 = vld [vmem:[#allocation6 + $0x30] sm:$0xff]  ;;  %p361_p1 = scmp.ne.s32.totalorder %s223_s12, %s360_s13  ;;  %p366_p3 = scmp.lt.s32.totalorder %s360_s13, %s360_s13 }
  0x29   :  { %258 = vmatpush3.msra.mxu0 %v88_v1  ;;  %v79_v11 = vld [vmem:[#allocation6 + $0x28] sm:$0xff]  ;;  %v78_v12 = vld [vmem:[#allocation6 + $0x20] sm:$0xff]  ;;  %v77_v13 = vld [vmem:[#allocation6 + $0x18] sm:$0xff] }
  0x2a   :  { %259 = vmatprep.subr.mxu0 %v87_v2  ;;  %v76_v14 = vld [vmem:[#allocation6 + $0x10] sm:$0xff]  ;;  %v75_v15 = vld [vmem:[#allocation6 + $0x8] sm:$0xff]  ;;  %v74_v16 = vld [vmem:[#allocation6] sm:$0xff]  ;;  %p367_p4 = por %p366_p3, %p365_p2 }
  0x2b   :  { %260 = vmatpush3.msra.mxu0 %v87_v2  ;;  %v73_v17 = vld [vmem:[#allocation3 + $0x8] sm:$0xff]  ;;  %v66_v19 = vld [vmem:[#allocation8] sm:$0xff]  ;;  %v67_v22 = vld [vmem:[#allocation8 + $0x8] sm:$0xff] }
  0x2c   :  { %261 = vmatprep.subr.mxu0 %v86_v3  ;;  %v235_v39 = vld [vmem:[%s455_s3] ss:$0 sm:$0xff]  ;;  %p368_p5 = pnand %p367_p4, %p361_p1 }
  0x2d   :  { %262 = vmatpush3.msra.mxu0 %v86_v3  ;;  %v236_v41 = vld [vmem:[%s456_s4] ss:$0 sm:$0xff] }
  0x2e   :  { %263 = vmatprep.subr.mxu0 %v85_v5 }
  0x2f   :  { %264 = vmatpush3.msra.mxu0 %v85_v5 }
  0x30   :  { %265 = vmatprep.subr.mxu0 %v84_v6 }
  0x31   :  { %266 = vmatpush3.msra.mxu0 %v84_v6 }
  0x32   :  { %267 = vmatprep.subr.mxu0 %v83_v7 }
  0x33   :  { %268 = vmatpush3.msra.mxu0 %v83_v7 }
  0x34   :  { %269 = vmatprep.subr.mxu0 %v82_v8 }
  0x35   :  { %270 = vmatpush3.msra.mxu0 %v82_v8 }
  0x36   :  { %271 = vmatprep.subr.mxu0 %v81_v9 }
  0x37   :  { %272 = vmatpush3.msra.mxu0 %v81_v9 }
  0x38   :  { %273 = vmatprep.subr.mxu0 %v80_v10 }
  0x39   :  { %274 = vmatpush3.msra.mxu0 %v80_v10 }
  0x3a   :  { %275 = vmatprep.subr.mxu0 %v79_v11 }
  0x3b   :  { %276 = vmatpush3.msra.mxu0 %v79_v11 }
  0x3c   :  { %277 = vmatprep.subr.mxu0 %v78_v12 }
  0x3d   :  { %278 = vmatpush3.msra.mxu0 %v78_v12 }
  0x3e   :  { %279 = vmatprep.subr.mxu0 %v77_v13 }
  0x3f   :  { %280 = vmatpush3.msra.mxu0 %v77_v13 }
  0x40   :  { %281 = vmatprep.subr.mxu0 %v76_v14 }
  0x41   :  { %282 = vmatpush3.msra.mxu0 %v76_v14 }
  0x42   :  { %283 = vmatprep.subr.mxu0 %v75_v15 }
  0x43   :  { %284 = vmatpush3.msra.mxu0 %v75_v15 }
  0x44   :  { %285 = vmatprep.subr.mxu0 %v74_v16 }
  0x45   :  { %286 = vmatpush3.msra.mxu0 %v74_v16 }
  0x46   :  { %288 = vmatmul.mubr.f32.vlgmr.msra.gmra.mxu0 %v73_v17 }
 0x106   :  { %v289_v18 = vpop.f32.mrf.mxu0 }
 0x107   :  { %v166_v23 = vadd.f32 %v289_v18, %v67_v22 }
 0x108   :  { %v156_v20 = vpop.f32.mrf.mxu0 }
 0x109   :  { %v165_v21 = vadd.f32 %v156_v20, %v66_v19 }
 0x10b   :  { %176 = vadd.xlane.f32.xlu0 %v165_v21 }
 0x10f   :  { %178 = vadd.xlane.f32.xlu0 %v166_v23 }
 0x194   :  { %v177_v24 = vpop.xlane.xlu0 %176 }
 0x195   :  { %v181_v25 = vmul.f32 0.0078125, %v177_v24 }
 0x197   :  { %v183_v26 = vsub.f32 %v165_v21, %v181_v25 }
 0x198   :  { %v179_v27 = vpop.xlane.xlu0 %178 }
 0x199   :  { %v182_v28 = vmul.f32 0.0078125, %v179_v27  ;;  %v185_v29 = vmul.f32 %v183_v26, %v183_v26 }
 0x19b   :  { %v184_v30 = vsub.f32 %v166_v23, %v182_v28  ;;  %187 = vadd.xlane.f32.xlu1 %v185_v29 }
 0x19d   :  { %v186_v31 = vmul.f32 %v184_v30, %v184_v30 }
 0x19f   :  { %189 = vadd.xlane.f32.xlu1 %v186_v31 }
 0x224   :  { %v188_v32 = vpop.xlane.xlu1 %187 }
 0x225   :  { %v191_v33 = vmul.f32 0.0078125, %v188_v32 }
 0x227   :  { %v193_v34 = vadd.f32 1e-06, %v191_v33 }
 0x228   :  { %v190_v35 = vpop.xlane.xlu1 %189 }
 0x229   :  { %296 = vrsqrt.f32 %v193_v34  ;;  %v192_v36 = vmul.f32 0.0078125, %v190_v35 }
 0x22b   :  { %v194_v37 = vadd.f32 1e-06, %v192_v36 }
 0x22d   :  { %298 = vrsqrt.f32 %v194_v37 }
 0x236   :  { %v297_v38 = vpop.eup %296 }
 0x237   :  { %v197_v40 = vmul.f32 %v297_v38, %v183_v26 }
 0x239   :  { %v205_v42 = vmul.f32 %v235_v39, %v197_v40 }
 0x23a   :  { %v299_v43 = vpop.eup %298 }
 0x23b   :  { %v198_v44 = vmul.f32 %v299_v43, %v184_v30  ;;  %v213_v45 = vadd.f32 %v236_v41, %v205_v42 }
 0x23d   :  { %v206_v46 = vmul.f32 %v235_v39, %v198_v44  ;;  %215 = vst [vmem:[#allocation9] sm:$0xff] %v213_v45 }
 0x23f   :  { %v214_v47 = vadd.f32 %v236_v41, %v206_v46 }
 0x241   :  { %216 = vst [vmem:[#allocation9 + $0x8] sm:$0xff] %v214_v47 }
 0x242   :  { %371 = shalt.err (!%p368_p5)
}
 0x243   :  { %228 = dma.vmem_to_hbm [thread:$0]  %s223_s12, 256, %s457_s5, [#allocation5], %s388_s23, %s388_s23, %s389_s24  }
 0x244   :  { %384 = dma.done.wait [#allocation5], 256  }
 0x245   :  { %385 = vsyncadd [#allocation5], 4294967040 }
 0x246   :  { %232 = vsyncpa [#allocation4], 1 }
 0x247   :  { %233 = vsyncpa [#allocation7], 1 }
 0x248   :  { %234 = vsyncpa [#allocation5], 1 }

</bundles_post_ra>
